<compile_context>
chip_gen: v7x
topology: tpu7x:2x2x1
jax: 0.10.0
libtpu: 0.0.40
codegen_flags: <defaults>
</compile_context>

<pallas_src>
import functools

import jax
import jax.numpy as jnp
from jax.experimental import pallas as pl
from jax.experimental.pallas import tpu as pltpu


def _entropy_loss_kernel(x_ref, o_ref, acc_ref, *, l_total, need_mask):
    # x_ref:   (1, C, TL) input tile — channels on sublanes, spatial on lanes.
    # o_ref:   (1, 1, 1) f32 per-batch partial sum (resident across the k axis).
    # acc_ref: (1, TL) f32 per-lane partial-sum accumulator (persistent scratch).
    k = pl.program_id(1)

    @pl.when(k == 0)
    def _init():
        acc_ref[...] = jnp.zeros_like(acc_ref)

    x = x_ref[0].astype(jnp.float32)               # (C, TL), f32 math
    m = jnp.max(x, axis=0, keepdims=True)          # (1, TL) per-position max
    xm = x - m
    ex = jnp.exp(xm)                               # (C, TL)
    s = jnp.sum(ex, axis=0, keepdims=True)         # (1, TL) softmax denom
    w = jnp.sum(ex * xm, axis=0, keepdims=True)    # (1, TL) sum_c ex*(x-m)
    # Fused:  sum_c p*log(p) = w/s - log(s)   (no p / logp temporaries).
    # Exact divide kept (vs approx reciprocal) so the result matches the f32
    # reference to ~1e-6.
    ent = w / s - jnp.log(s)                       # (1, TL)

    if need_mask:
        tl = ent.shape[-1]
        col = jax.lax.broadcasted_iota(jnp.int32, ent.shape, 1) + k * tl
        ent = jnp.where(col < l_total, ent, 0.0)   # zero padded remainder lanes

    acc_ref[...] += ent

    @pl.when(k == pl.num_programs(1) - 1)
    def _finalize():
        o_ref[...] = jnp.sum(acc_ref[...]).reshape(1, 1, 1)


def entropy_loss(embedding, *, lane_tile_cap=8192, target_tile_bytes=2 * 1024 * 1024):
    """embedding: (N, C, H, W) array (NCHW, like the PyTorch module). Returns scalar f32."""
    n, c, h, w = embedding.shape
    l = h * w
    x3 = embedding.reshape(n, c, l)                # free reshape; NO transpose

    itemsize = jnp.dtype(embedding.dtype).itemsize
    # Lane tile: multiple of 128, sized so one (1, C, TL) input buffer stays a
    # few MiB (x2 double-buffering) — safe for v5e/v6e/v7x scoped VMEM.
    tl_cap = max(128, min(lane_tile_cap,
                          (target_tile_bytes // max(1, c * itemsize)) // 128 * 128))
    if l <= tl_cap:
        tl = l                                     # full lane extent (always a legal block dim)
    else:
        tl = tl_cap                                # multiple of 128; remainder masked in-kernel
    num_l_tiles = pl.cdiv(l, tl)
    need_mask = (l % tl) != 0

    kernel = functools.partial(
        _entropy_loss_kernel, l_total=l, need_mask=need_mask)

    cost = pl.CostEstimate(
        flops=6 * n * c * l,
        transcendentals=n * c * l + n * l,          # exp per element + log per position
        bytes_accessed=n * c * l * itemsize + 4 * n)

    partials = pl.pallas_call(
        kernel,
        out_shape=jax.ShapeDtypeStruct((n, 1, 1), jnp.float32),
        grid_spec=pltpu.PrefetchScalarGridSpec(
            num_scalar_prefetch=0,
            grid=(n, num_l_tiles),
            in_specs=[pl.BlockSpec((1, c, tl), lambda i, j: (i, 0, j))],
            out_specs=pl.BlockSpec((1, 1, 1), lambda i, j: (i, 0, 0)),
            scratch_shapes=[pltpu.VMEM((1, tl), jnp.float32)],
        ),
        compiler_params=pltpu.CompilerParams(
            dimension_semantics=("parallel", "arbitrary"),
            vmem_limit_bytes=32 * 1024 * 1024,
        ),
        cost_estimate=cost,
    )(x3)
    # Tiny final reduction over N per-batch partials + the mean normalization.
    return jnp.sum(partials) / jnp.float32(n * l)


def _reference(embedding):
    # Pure-JAX reference of the PyTorch forward (for sanity check).
    p = jax.nn.softmax(embedding, axis=1)
    minus_ent = jnp.sum(p * jnp.log(p), axis=1)
    return jnp.mean(minus_ent)


if __name__ == "__main__":
    key = jax.random.PRNGKey(0)

    # Primary shape consistent with a conv-style embedding: NCHW = (2, 4, 16, 16)
    x = jax.random.normal(key, (2, 4, 16, 16), dtype=jnp.float32)
    out = entropy_loss(x)
    jax.block_until_ready(out)
    ref = _reference(x)
    assert jnp.allclose(out, ref, atol=1e-5, rtol=1e-5), (out, ref)

    # Secondary check: force the tiled + masked-remainder path (L=144, TL=128).
    x2 = jax.random.normal(jax.random.PRNGKey(1), (2, 4, 12, 12), dtype=jnp.float32)
    out2 = entropy_loss(x2, lane_tile_cap=128)
    jax.block_until_ready(out2)
    ref2 = _reference(x2)
    assert jnp.allclose(out2, ref2, atol=1e-5, rtol=1e-5), (out2, ref2)

    print("KERNEL_OK")
</pallas_src>

<mosaic_0001>
module attributes {stable_mosaic.version = 11 : i64} {
  func.func @_entropy_loss_kernel(%arg0: i32, %arg1: i32, %arg2: memref<1x4x256xf32, #tpu.memory_space<vmem>>, %arg3: memref<1x1x1xf32, #tpu.memory_space<vmem>>, %arg4: memref<1x256xf32, #tpu.memory_space<vmem>>) attributes {dimension_semantics = [#tpu.dimension_semantics<parallel>, #tpu.dimension_semantics<arbitrary>], iteration_bounds = array<i64: 2, 1>, scalar_prefetch = 0 : i64, scratch_operands = 1 : i64, tpu.core_type = #tpu.core_type<tc>, window_params = [{transform_indices = @transform_0, window_bounds = array<i64: 1, 4, 256>}, {transform_indices = @transform_1, window_bounds = array<i64: 1, 1, 1>}]} {
    %c0_i32 = arith.constant 0 : i32
    %0 = arith.cmpi eq, %arg1, %c0_i32 : i32
    %1 = arith.extui %0 : i1 to i32
    %c0_i32_0 = arith.constant 0 : i32
    %2 = arith.cmpi ne, %1, %c0_i32_0 : i32
    scf.if %2 {
      %cst_11 = arith.constant 0.000000e+00 : f32
      %24 = vector.broadcast %cst_11 : f32 to vector<1x256xf32>
      %c0_12 = arith.constant 0 : index
      %c0_13 = arith.constant 0 : index
      %25 = vector.load %arg4[%c0_12, %c0_13] : memref<1x256xf32, #tpu.memory_space<vmem>>, vector<1x256xf32>
      tpu.vector_store %arg4[%c0_12, %c0_13], %24 {strides = array<i32>} : memref<1x256xf32, #tpu.memory_space<vmem>>, vector<1x256xf32>,
    } else {
    }
    %c0 = arith.constant 0 : index
    %c0_1 = arith.constant 0 : index
    %c0_2 = arith.constant 0 : index
    %3 = vector.load %arg2[%c0, %c0_1, %c0_2] : memref<1x4x256xf32, #tpu.memory_space<vmem>>, vector<1x4x256xf32>
    %4 = vector.shape_cast %3 : vector<1x4x256xf32> to vector<4x256xf32>
    %cst = arith.constant dense<0xFF800000> : vector<256xf32>
    %5 = vector.multi_reduction <maximumf>, %4, %cst [0] : vector<4x256xf32> to vector<256xf32>
    %6 = vector.shape_cast %5 : vector<256xf32> to vector<1x256xf32>
    %7 = vector.broadcast %6 : vector<1x256xf32> to vector<4x256xf32>
    %8 = arith.subf %4, %7 : vector<4x256xf32>
    %9 = math.exp %8 : vector<4x256xf32>
    %cst_3 = arith.constant dense<0.000000e+00> : vector<256xf32>
    %10 = vector.multi_reduction <add>, %9, %cst_3 [0] : vector<4x256xf32> to vector<256xf32>
    %11 = vector.shape_cast %10 : vector<256xf32> to vector<1x256xf32>
    %12 = arith.mulf %9, %8 : vector<4x256xf32>
    %cst_4 = arith.constant dense<0.000000e+00> : vector<256xf32>
    %13 = vector.multi_reduction <add>, %12, %cst_4 [0] : vector<4x256xf32> to vector<256xf32>
    %14 = vector.shape_cast %13 : vector<256xf32> to vector<1x256xf32>
    %15 = arith.divf %14, %11 : vector<1x256xf32>
    %16 = math.log %11 : vector<1x256xf32>
    %17 = arith.subf %15, %16 : vector<1x256xf32>
    %c0_5 = arith.constant 0 : index
    %c0_6 = arith.constant 0 : index
    %18 = vector.load %arg4[%c0_5, %c0_6] : memref<1x256xf32, #tpu.memory_space<vmem>>, vector<1x256xf32>
    %19 = arith.addf %18, %17 : vector<1x256xf32>
    %c0_7 = arith.constant 0 : index
    %c0_8 = arith.constant 0 : index
    %20 = vector.load %arg4[%c0_7, %c0_8] : memref<1x256xf32, #tpu.memory_space<vmem>>, vector<1x256xf32>
    tpu.vector_store %arg4[%c0_7, %c0_8], %19 {strides = array<i32>} : memref<1x256xf32, #tpu.memory_space<vmem>>, vector<1x256xf32>,
    %c0_i32_9 = arith.constant 0 : i32
    %21 = arith.cmpi eq, %arg1, %c0_i32_9 : i32
    %22 = arith.extui %21 : i1 to i32
    %c0_i32_10 = arith.constant 0 : i32
    %23 = arith.cmpi ne, %22, %c0_i32_10 : i32
    scf.if %23 {
      %c0_11 = arith.constant 0 : index
      %c0_12 = arith.constant 0 : index
      %24 = vector.load %arg4[%c0_11, %c0_12] : memref<1x256xf32, #tpu.memory_space<vmem>>, vector<1x256xf32>
      %25 = vector.shape_cast %24 : vector<1x256xf32> to vector<1x1x256xf32>
      %cst_13 = arith.constant dense<0.000000e+00> : vector<1xf32>
      %26 = vector.multi_reduction <add>, %25, %cst_13 [1, 2] : vector<1x1x256xf32> to vector<1xf32>
      %27 = vector.shape_cast %26 : vector<1xf32> to vector<1x1x1xf32>
      %28 = vector.extract %27[0, 0, 0] : f32 from vector<1x1x1xf32>
      %29 = vector.broadcast %28 : f32 to vector<1x1x1xf32>
      %c0_14 = arith.constant 0 : index
      %c0_15 = arith.constant 0 : index
      %c0_16 = arith.constant 0 : index
      %30 = vector.load %arg3[%c0_14, %c0_15, %c0_16] : memref<1x1x1xf32, #tpu.memory_space<vmem>>, vector<1x1x1xf32>
      tpu.vector_store %arg3[%c0_14, %c0_15, %c0_16], %29 {strides = array<i32>} : memref<1x1x1xf32, #tpu.memory_space<vmem>>, vector<1x1x1xf32>,
    } else {
    }
    return
  }
  func.func @transform_0(%arg0: i32, %arg1: i32) -> (i32, i32, i32) {
    %c0_i32 = arith.constant 0 : i32
    %c0_i32_0 = arith.constant 0 : i32
    return %arg0, %c0_i32, %arg1 : i32, i32, i32
  }
  func.func @transform_1(%arg0: i32, %arg1: i32) -> (i32, i32, i32) {
    %c0_i32 = arith.constant 0 : i32
    %c0_i32_0 = arith.constant 0 : i32
    %c0_i32_1 = arith.constant 0 : i32
    return %arg0, %c0_i32, %c0_i32_0 : i32, i32, i32
  }
}

</mosaic_0001>

<bundles_post_ra>
// kernel: tpu_custom_call.1
= control target key start
LH: loop header
LB: loop body
LE: loop exit
PB: predicated region body
PF: predicated region fallthrough
CT: control target
= control target key end

     0   :  { %6 = vsyncpa [#allocation4], 0  ;;  %s672_s0 = inlined_call_operand.hbm [shape: f32[2,4,256], index: 0, kind: input, shape index: {}]   ;;  %s673_s1 = inlined_call_operand.vmem [shape: f32[2,1,1], index: 1, kind: output, shape index: {}]  }
   0x1   :  { %8 = vsyncpa [#allocation4 + $0x1], 0  ;;  %s531_s6 = smov 0   ;;  %s533_s7 = smov 0  }
   0x2   :  { %s535_s8 = smov 0   ;;  %s537_s9 = smov 0  }
   0x3   :  { %s539_s10 = smov 0   ;;  %s541_s11 = smov 0  }
   0x4 LB: > { %s354_s12 = sadd.s32 4294967295, %s516_s11   ;;  %s26_s13 = sadd.s32 1, %s512_s10  ;;  %s516_s11 = sphi %s541_s11, %s14_s11   ;;  %s512_s10 = sphi %s539_s10, %s685_s10   ;;  %s508_s9 = sphi %s537_s9, %s684_s9   ;;  %s504_s8 = sphi %s535_s8, %s683_s8   ;;  %s500_s7 = sphi %s533_s7, %s682_s7   ;;  %s496_s6 = sphi %s531_s6, %s681_s6  }
   0x5   : > { %p28_p0 = scmp.ge.s32.totalorder %s26_s13, 2  ;;  %s35_s14 = sadd.s32 1, %s504_s8 }
   0x6   : > { %p42_p1 = scmp.ne.s32.totalorder %s504_s8, %s500_s7  ;;  %p43_p2 = scmp.eq.s32.totalorder %s516_s11, 0 }
   0x7   : > { %s687_s13 = smov (%p28_p0, %s26_s13), 0  ;;  %p48_p4 = scmp.ne.s32.totalorder %s500_s7, %s496_s6 }
   0x8   : > { %p567_p3 = por %p43_p2, %p42_p1  ;;  %s30_s16 = ssub.s32 %s512_s10, %s687_s13 }
   0x9   : > { %p49_p5 = scmp.eq.s32.totalorder %s354_s12, 0  ;;  %p33_p6 = scmp.eq.s32.totalorder %s30_s16, 0 }
   0xa   : > { %p374_p8 = scmp.lt.s32.totalorder %s516_s11, 2  ;;  %s98_s19 = sand.u32 1, %s504_s8  }
   0xb   : > { %p574_p7 = por %p49_p5, %p48_p4  ;;  %s365_s20 = sshll.u32 %s512_s10, 7 }
   0xc   : > { %s580_s18 = scalar_select %p33_p6, %s504_s8, %s35_s14  }
   0xd   : > { %s358_s21 = sshll.u32 %s98_s19, 3  ;;  %s587_s24 = scalar_lea.hbm %s672_s0, %s365_s20 }
   0xe   : > { %s102_s25 = scalar_lea.vmem [#allocation3], %s358_s21  ;;  %p591_p9 = pnand %p374_p8, %p567_p3 }
   0xf   : > { %s112_s26 = sshll.u32 %s102_s25, 4  ;;  %s99_s28 = scalar_lea.sflag [#allocation4], %s98_s19  ;;  %s595_s26 = int_to_ptr.vmem [resolvable:$true] %s112_s26 }
  0x10   : > { %s436_s29 = scalar_lea.hbm %s587_s24, 128  ;;  %p438_p13 = pneg %p591_p9 }
  0x11   : > { %p437_p12 = scmp.ne.s32.totalorder %s587_s24, %s436_s29  ;;  %s441_s3 = scalar_lea.hbm %s672_s0, 256 }
  0x12   : > { %p442_p2 = scmp.lt.u32.totalorder %s587_s24, %s672_s0  ;;  %p443_p3 = scmp.lt.u32.totalorder %s441_s3, %s436_s29 }
  0x13   : > { %p439_p0 = pnand %p438_p13, %p437_p12  ;;  %p445_p5 = scmp.lt.u32.totalorder %s436_s29, %s587_s24 }
  0x14   : > { %p444_p4 = por %p443_p3, %p442_p2 }
  0x15   : > { %p440_p1 = pneg %p439_p0 }
  0x16   : > { %p446_p6 = por %p445_p5, %p444_p4 }
  0x18   : > { %p447_p8 = pnand %p446_p6, %p440_p1 }
  0x1a   : > { %450 = shalt.err (!%p447_p8)
}
  0x1b   : > { %s451_s6 = scalar_lea.vmem %s595_s26, 128  ;;  %s518_s12 = smov [#allocation3]  }
  0x1c   : > { %p452_p12 = scmp.ne.s32.totalorder %s595_s26, %s451_s6  ;;  %s456_s14 = sshll.u32 %s518_s12, 4  ;;  %s457_s14 = int_to_ptr.vmem [resolvable:$false] %s456_s14 }
  0x1d   : > { %s458_s15 = scalar_lea.vmem %s457_s14, 256  ;;  %p459_p11 = scmp.lt.s32.totalorder %s595_s26, %s457_s14 }
  0x1e   : > { %p454_p0 = pnand %p452_p12, %p438_p13  ;;  %p460_p2 = scmp.lt.s32.totalorder %s458_s15, %s451_s6 }
  0x20   : > { %p455_p10 = pneg %p454_p0  ;;  %p461_p3 = por %p460_p2, %p459_p11 }
  0x22   : > { %p462_p4 = pnand %p461_p3, %p455_p10 }
  0x24   : > { %465 = shalt.err (!%p462_p4)
}
  0x25   : > { %373 = dma.hbm_to_vmem [thread:$0]  (!%p591_p9), %s587_s24, 128, %s595_s26, %s99_s28  }
  0x26   : > { %p677_p1 = scmp.lt.s32.totalorder %s516_s11, 3  ;;  %p678_p5 = scmp.ge.s32.totalorder %s516_s11, 1 }
  0x28   : > { %p118_p13 = pnand %p678_p5, %p677_p1 }
  0x29   : > { %s123_s16 = sand.u32 (!%p118_p13), 1, %s500_s7  }
  0x2a   : > { %121 = sbr.rel (%p118_p13) target bundleno = 341 (0x155), region = 24  ;;  %s362_s19 = sshll.u32 (!%p118_p13), %s123_s16, 3 }
  0x2b   : > { %s124_s20 = scalar_lea.sflag (!%p118_p13), [#allocation4], %s123_s16  ;;  %s127_s21 = scalar_lea.vmem (!%p118_p13), [#allocation3], %s362_s19 }
  0x31   : > { %491 = dma.done.wait (%p574_p7), %s124_s20, 128  }
  0x32   : > { %493 = vsyncadd (%p574_p7), %s124_s20, 4294967168  ;;  %v152_v0 = vlaneseq  ;;  %v519_v2 = vmov 0.0   ;;  %vm161_vm1 = vcmask 1043456   ;;  %v157_v3 = vld [vmem:[%s127_s21] sm:$0xff]  ;;  %v520_v53 = vmov 1966171168  }
  0x33   : > { %v159_v4 = vcombine.high %v157_v3, %v157_v3  ;;  %v162_v5 = vsel %vm161_vm1, %v157_v3, -inf  ;;  %v233_v54 = vunpack.c.l.s4 %v520_v53  ;;  %vm268_vm2 = vcmask 1040384   ;;  %p145_p7 = scmp.lt.s32.totalorder %s508_s9, 1 }
  0x34   : > { %vm634_vm0 = vcmp.lt.s32.totalorder %v152_v0, 256  ;;  %v163_v6 = vrot.slane %v162_v5, 4  ;;  %v236_v62 = vshrl.u32 %v152_v0, 7  ;;  %vm282_vm3 = vcmask 0  }
  0x35   : > { %156 = vst.msk [vmem:[#allocation2] sm:$0x3] %vm634_vm0, %v519_v2  ;;  %v169_v7 = vsel %vm161_vm1, %v159_v4, -inf  ;;  %v234_v61 = vunpack.c.0.s8 %v233_v54  ;;  %s689_s9 = smov (!%p145_p7, %s508_s9), 1 }
  0x36   : > { %v164_v8 = vmax.f32 %v162_v5, %v163_v6  ;;  %v170_v9 = vrot.slane %v169_v7, 4  ;;  %s147_s23 = scalar_lea.vmem %s673_s1, %s689_s9 }
  0x37   : > { %v237_v6 = vsub.s32 %v234_v61, %v236_v62 }
  0x38   : > { %v165_v10 = vrot.slane %v164_v8, 2  ;;  %v171_v11 = vmax.f32 %v169_v7, %v170_v9 }
  0x3a   : > { %v166_v12 = vmax.f32 %v164_v8, %v165_v10  ;;  %v172_v13 = vrot.slane %v171_v11, 2 }
  0x3c   : > { %v167_v14 = vrot.slane %v166_v12, 1  ;;  %v173_v15 = vmax.f32 %v171_v11, %v172_v13  ;;  %v228_v9 = vld [vmem:[#allocation2] sm:$0x3]  ;;  %v264_v13 = vsub.s32 1, %v236_v62 }
  0x3e   : > { %v168_v16 = vmax.f32 %v166_v12, %v167_v14  ;;  %v174_v17 = vrot.slane %v173_v15, 1  ;;  %v260_v12 = vsub.s32 0, %v236_v62 }
  0x40   : > { %v175_v18 = vmax.f32 %v173_v15, %v174_v17 }
  0x42   : > { %v178_v19 = vcombine.low %v168_v16, %v175_v18 }
  0x44   : > { %v180_v20 = vsub.f32 %v157_v3, %v178_v19 }
  0x46   : > { %v181_v21 = vmul.f32 1.442695, %v180_v20 }
  0x48   : > { %426 = vpow2.f32 %v181_v21 }
  0x52   : > { %v427_v22 = vpop.eup %426 }
  0x53   : > { %v184_v23 = vcombine.high %v427_v22, %v427_v22  ;;  %v186_v24 = vsel %vm161_vm1, %v427_v22, 0.0  ;;  %v200_v25 = vmul.f32 %v427_v22, %v180_v20 }
  0x54   : > { %v187_v26 = vrot.slane %v186_v24, 4 }
  0x55   : > { %v193_v27 = vsel %vm161_vm1, %v184_v23, 0.0  ;;  %v202_v28 = vcombine.high %v200_v25, %v200_v25  ;;  %v204_v29 = vsel %vm161_vm1, %v200_v25, 0.0 }
  0x56   : > { %v188_v30 = vadd.f32 %v187_v26, %v186_v24  ;;  %v194_v31 = vrot.slane %v193_v27, 4  ;;  %v205_v32 = vrot.slane %v204_v29, 4 }
  0x57   : > { %v211_v33 = vsel %vm161_vm1, %v202_v28, 0.0 }
  0x58   : > { %v189_v34 = vrot.slane %v188_v30, 2  ;;  %v195_v35 = vadd.f32 %v194_v31, %v193_v27  ;;  %v206_v36 = vadd.f32 %v205_v32, %v204_v29  ;;  %v212_v37 = vrot.slane %v211_v33, 4 }
  0x5a   : > { %v190_v38 = vadd.f32 %v189_v34, %v188_v30  ;;  %v196_v39 = vrot.slane %v195_v35, 2  ;;  %v213_v40 = vadd.f32 %v212_v37, %v211_v33  ;;  %v207_v41 = vrot.slane %v206_v36, 2 }
  0x5c   : > { %v191_v42 = vrot.slane %v190_v38, 1  ;;  %v197_v43 = vadd.f32 %v196_v39, %v195_v35  ;;  %v214_v44 = vrot.slane %v213_v40, 2  ;;  %v208_v47 = vadd.f32 %v207_v41, %v206_v36 }
  0x5e   : > { %v192_v45 = vadd.f32 %v191_v42, %v190_v38  ;;  %v198_v46 = vrot.slane %v197_v43, 1  ;;  %v215_v49 = vadd.f32 %v214_v44, %v213_v40  ;;  %v209_v50 = vrot.slane %v208_v47, 1 }
  0x60   : > { %v199_v48 = vadd.f32 %v198_v46, %v197_v43  ;;  %428 = vrcp.f32 %v192_v45  ;;  %v216_v51 = vrot.slane %v215_v49, 1  ;;  %v210_v52 = vadd.f32 %v209_v50, %v208_v47 }
  0x61   : > { %430 = vlog2.f32 %v192_v45 }
  0x62   : > { %432 = vrcp.f32 %v199_v48  ;;  %v217_v55 = vadd.f32 %v216_v51, %v215_v49 }
  0x63   : > { %434 = vlog2.f32 %v199_v48 }
  0x6a   : > { %v429_v56 = vpop.eup %428 }
  0x6b   : > { %v431_v57 = vpop.eup %430  ;;  %v219_v58 = vmul.f32 %v429_v56, %v210_v52 }
  0x6c   : > { %v433_v59 = vpop.eup %432  ;;  %v223_v60 = vmul.f32 0.6931472, %v431_v57 }
  0x6d   : > { %v435_v63 = vpop.eup %434  ;;  %v221_v2 = vmul.f32 %v433_v59, %v217_v55 }
  0x6e   : > { %v225_v3 = vmul.f32 0.6931472, %v435_v63  ;;  %v226_v4 = vsub.f32 %v219_v58, %v223_v60 }
  0x70   : > { %v227_v5 = vsub.f32 %v221_v2, %v225_v3 }
  0x72   : > { %v231_v7 = vcombine.low %v226_v4, %v227_v5 }
  0x74   : > { %v238_v8 = vrot.slane %v231_v7, %v237_v6 }
  0x76   : > { %v245_v10 = vrot.slane %v238_v8, %v237_v6 }
  0x78   : > { %v247_v11 = vadd.f32 %v245_v10, %v228_v9 }
  0x7a   : > { %252 = vst.msk [vmem:[#allocation2] sm:$0x3] %vm634_vm0, %v247_v11 }
  0x81   : > { %v256_v14 = vld [vmem:[#allocation2] sm:$0x3] }
  0x82   : > { %v261_v0 = vrot.slane %v256_v14, %v260_v12  ;;  %v265_v15 = vrot.slane %v256_v14, %v264_v13 }
  0x84   : > { %v269_v16 = vsel %vm268_vm2, %v261_v0, 0.0  ;;  %v270_v17 = vsel %vm268_vm2, %v265_v15, 0.0 }
  0x85   : > { %v271_v18 = vadd.f32 %v270_v17, %v269_v16 }
  0x87   : > { %272 = vadd.xlane.f32.xlu0 %v271_v18 }
 0x114   : > { %v273_v19 = vpop.xlane.xlu0 %272 }
 0x115   : > { %v274_v20 = vrot.slane %v273_v19, 4 }
 0x117   : > { %v275_v21 = vadd.f32 %v274_v20, %v273_v19 }
 0x119   : > { %v276_v22 = vrot.slane %v275_v21, 2 }
 0x11b   : > { %v277_v23 = vadd.f32 %v276_v22, %v275_v21 }
 0x11d   : > { %v278_v24 = vrot.slane %v277_v23, 1 }
 0x11f   : > { %v279_v1 = vadd.f32 %v278_v24, %v277_v23 }
 0x121   : > { %366 = vpush %v279_v1 }
 0x152   : > { %s367_s24 = spop %366 }
 0x153   : > { %v281_v25 = vstv %s367_s24 }
 0x154   : > { %283 = vst.msk [vmem:[%s147_s23] sm:$0x1] %vm282_vm3, %v281_v25 }
 0x155 PF: > { %s14_s11 = sadd.s32 1, %s516_s11   ;;  %s681_s6 = smov %s500_s7 }
 0x156   : > { %p11_p9 = scmp.ge.s32.totalorder %s14_s11, 4   ;;  %s682_s7 = smov %s504_s8 }
 0x157   : > { %s683_s8 = smov %s580_s18  ;;  %s684_s9 = smov %s512_s10 }
 0x158   : > { %s685_s10 = smov %s687_s13  ;;  %13 = sbr.rel (!%p11_p9) target bundleno = 4 (0x4), region = 72 }
 0x15f   :  { %301 = vsyncpa [#allocation4], 1 }
 0x160   :  { %303 = vsyncpa [#allocation4 + $0x1], 1 }

</bundles_post_ra>
